<compile_context>
chip_gen: v5e
topology: v5e:2x2
jax: 0.10.0
libtpu: 0.0.40
codegen_flags: <defaults>
</compile_context>

<pallas_src>
import functools

import jax
import jax.numpy as jnp
from jax.experimental import pallas as pl
from jax.experimental.pallas import tpu as pltpu

_LANES = 128


def _round_up(n, m):
    return ((n + m - 1) // m) * m


def _mlp_kernel(x_ref, w1_ref, b1_ref, w2_ref, b2_ref, w3_ref, b3_ref, o_ref):
    # x_ref: (in_dim, bm) activation slab, batch on the lane axis.
    # w*_ref: PyTorch-layout (out_features, in_features); b*_ref: (out_features, 1).
    # Entire hot path (3 matmuls + biases + 2 ReLUs) stays in VMEM, f32 accumulation.
    h = jnp.dot(w1_ref[...], x_ref[...], preferred_element_type=jnp.float32)
    h = jnp.maximum(h + b1_ref[...], 0.0)
    h = jnp.dot(w2_ref[...], h, preferred_element_type=jnp.float32)
    h = jnp.maximum(h + b2_ref[...], 0.0)
    o = jnp.dot(w3_ref[...], h, preferred_element_type=jnp.float32) + b3_ref[...]
    o_ref[...] = o.astype(o_ref.dtype)


@functools.partial(jax.jit, static_argnames=("bm",))
def mlp_forward(x, w1, b1, w2, b2, w3, b3, *, bm=512):
    """Fused MLP forward.

    x:  (B, input_size) float32
    w*: PyTorch nn.Linear layout (out_features, in_features)
    b*: (out_features,)
    Returns (B, output_size) float32.
    """
    B, in_dim = x.shape
    h1 = w1.shape[0]
    h2 = w2.shape[0]
    out_dim = w3.shape[0]

    # ---- batch tiling ------------------------------------------------------
    b_ceil = _round_up(B, _LANES)
    bm_eff = min(bm, b_ceil)
    # v7x has 2 TensorCores: if one tile would cover the whole (padded) batch
    # but it splits evenly, use 2 grid steps so both cores get work.
    if bm_eff >= b_ceil and b_ceil >= 2 * _LANES and b_ceil % (2 * _LANES) == 0:
        bm_eff = b_ceil // 2
    B_pad = _round_up(B, bm_eff)
    grid = (B_pad // bm_eff,)

    # ---- lane-dense layout: batch -> lane axis, explicit tail padding ------
    xt = jnp.pad(x.T, ((0, 0), (0, B_pad - B)))  # (in_dim, B_pad)
    b1c = b1.reshape(h1, 1)
    b2c = b2.reshape(h2, 1)
    b3c = b3.reshape(out_dim, 1)

    in_specs = [
        pl.BlockSpec((in_dim, bm_eff), lambda i: (0, i)),   # activation slab
        pl.BlockSpec((h1, in_dim), lambda i: (0, 0)),       # resident weights
        pl.BlockSpec((h1, 1), lambda i: (0, 0)),
        pl.BlockSpec((h2, h1), lambda i: (0, 0)),
        pl.BlockSpec((h2, 1), lambda i: (0, 0)),
        pl.BlockSpec((out_dim, h2), lambda i: (0, 0)),
        pl.BlockSpec((out_dim, 1), lambda i: (0, 0)),
    ]
    out_specs = pl.BlockSpec((out_dim, bm_eff), lambda i: (0, i))

    out_t = pl.pallas_call(
        _mlp_kernel,
        out_shape=jax.ShapeDtypeStruct((out_dim, B_pad), jnp.float32),
        grid_spec=pl.GridSpec(grid=grid, in_specs=in_specs, out_specs=out_specs),
        compiler_params=pltpu.CompilerParams(
            dimension_semantics=("parallel",),
        ),
    )(xt, w1, b1c, w2, b2c, w3, b3c)

    return out_t[:, :B].T  # back to (B, output_size)


def init_linear(key, fan_in, fan_out):
    """PyTorch-style nn.Linear init: U(-1/sqrt(fan_in), 1/sqrt(fan_in)).

    Weight returned in PyTorch layout (fan_out, fan_in), bias (fan_out,).
    """
    kw, kb = jax.random.split(key)
    bound = 1.0 / jnp.sqrt(fan_in)
    w = jax.random.uniform(kw, (fan_out, fan_in), jnp.float32, -bound, bound)
    b = jax.random.uniform(kb, (fan_out,), jnp.float32, -bound, bound)
    return w, b


def mlp_reference(x, w1, b1, w2, b2, w3, b3):
    h = jnp.maximum(x @ w1.T + b1, 0.0)
    h = jnp.maximum(h @ w2.T + b2, 0.0)
    return h @ w3.T + b3


if __name__ == "__main__":
    # Shapes consistent with MLP(input_size, output_size, hidden_sizes=[32, 32]).
    # batch=1000 deliberately exercises the zero-padded tail and gives the
    # parallel grid 2 steps (bm=512 -> B_pad=1024) for v7x's two TensorCores.
    batch = 1000
    input_size = 8
    hidden_sizes = [32, 32]
    output_size = 16

    key = jax.random.PRNGKey(0)
    kx, k1, k2, k3 = jax.random.split(key, 4)

    x = jax.random.normal(kx, (batch, input_size), jnp.float32)
    w1, b1 = init_linear(k1, input_size, hidden_sizes[0])
    w2, b2 = init_linear(k2, hidden_sizes[0], hidden_sizes[1])
    w3, b3 = init_linear(k3, hidden_sizes[1], output_size)

    y = mlp_forward(x, w1, b1, w2, b2, w3, b3)
    y = jax.block_until_ready(y)

    y_ref = mlp_reference(x, w1, b1, w2, b2, w3, b3)
    assert y.shape == (batch, output_size)
    assert jnp.allclose(y, y_ref, atol=1e-4, rtol=1e-4), "mismatch vs reference"

    print("KERNEL_OK")
</pallas_src>

<mosaic_0001>
module attributes {stable_mosaic.version = 11 : i64} {
  func.func @_mlp_kernel(%arg0: i32, %arg1: memref<8x512xf32, #tpu.memory_space<vmem>>, %arg2: memref<32x8xf32, #tpu.memory_space<vmem>>, %arg3: memref<32x1xf32, #tpu.memory_space<vmem>>, %arg4: memref<32x32xf32, #tpu.memory_space<vmem>>, %arg5: memref<32x1xf32, #tpu.memory_space<vmem>>, %arg6: memref<16x32xf32, #tpu.memory_space<vmem>>, %arg7: memref<16x1xf32, #tpu.memory_space<vmem>>, %arg8: memref<16x512xf32, #tpu.memory_space<vmem>>) attributes {dimension_semantics = [#tpu.dimension_semantics<parallel>], iteration_bounds = array<i64: 2>, scalar_prefetch = 0 : i64, scratch_operands = 0 : i64, tpu.core_type = #tpu.core_type<tc>, window_params = [{transform_indices = @transform_0, window_bounds = array<i64: 8, 512>}, {pipeline_mode = #tpu.pipeline_mode<synchronous>, transform_indices = @transform_1, window_bounds = array<i64: 32, 8>}, {pipeline_mode = #tpu.pipeline_mode<synchronous>, transform_indices = @transform_2, window_bounds = array<i64: 32, 1>}, {pipeline_mode = #tpu.pipeline_mode<synchronous>, transform_indices = @transform_3, window_bounds = array<i64: 32, 32>}, {pipeline_mode = #tpu.pipeline_mode<synchronous>, transform_indices = @transform_4, window_bounds = array<i64: 32, 1>}, {pipeline_mode = #tpu.pipeline_mode<synchronous>, transform_indices = @transform_5, window_bounds = array<i64: 16, 32>}, {pipeline_mode = #tpu.pipeline_mode<synchronous>, transform_indices = @transform_6, window_bounds = array<i64: 16, 1>}, {transform_indices = @transform_7, window_bounds = array<i64: 16, 512>}]} {
    %c0 = arith.constant 0 : index
    %c0_0 = arith.constant 0 : index
    %0 = vector.load %arg2[%c0, %c0_0] : memref<32x8xf32, #tpu.memory_space<vmem>>, vector<32x8xf32>
    %c0_1 = arith.constant 0 : index
    %c0_2 = arith.constant 0 : index
    %1 = vector.load %arg1[%c0_1, %c0_2] : memref<8x512xf32, #tpu.memory_space<vmem>>, vector<8x512xf32>
    %cst = arith.constant dense<0.000000e+00> : vector<32x512xf32>
    %2 = tpu.matmul %0, %1, %cst {dimension_numbers = #tpu.dot_dimension_numbers<[1], [0], [0], [1], [0, 0, 1, 1], [], []>} : vector<32x8xf32>, vector<8x512xf32>, vector<32x512xf32> -> vector<32x512xf32>
    %c0_3 = arith.constant 0 : index
    %c0_4 = arith.constant 0 : index
    %3 = vector.load %arg3[%c0_3, %c0_4] : memref<32x1xf32, #tpu.memory_space<vmem>>, vector<32x1xf32>
    %4 = vector.broadcast %3 : vector<32x1xf32> to vector<32x512xf32>
    %5 = arith.addf %2, %4 : vector<32x512xf32>
    %cst_5 = arith.constant 0.000000e+00 : f32
    %6 = vector.broadcast %cst_5 : f32 to vector<32x512xf32>
    %7 = arith.maximumf %5, %6 : vector<32x512xf32>
    %c0_6 = arith.constant 0 : index
    %c0_7 = arith.constant 0 : index
    %8 = vector.load %arg4[%c0_6, %c0_7] : memref<32x32xf32, #tpu.memory_space<vmem>>, vector<32x32xf32>
    %cst_8 = arith.constant dense<0.000000e+00> : vector<32x512xf32>
    %9 = tpu.matmul %8, %7, %cst_8 {dimension_numbers = #tpu.dot_dimension_numbers<[1], [0], [0], [1], [0, 0, 1, 1], [], []>} : vector<32x32xf32>, vector<32x512xf32>, vector<32x512xf32> -> vector<32x512xf32>
    %c0_9 = arith.constant 0 : index
    %c0_10 = arith.constant 0 : index
    %10 = vector.load %arg5[%c0_9, %c0_10] : memref<32x1xf32, #tpu.memory_space<vmem>>, vector<32x1xf32>
    %11 = vector.broadcast %10 : vector<32x1xf32> to vector<32x512xf32>
    %12 = arith.addf %9, %11 : vector<32x512xf32>
    %cst_11 = arith.constant 0.000000e+00 : f32
    %13 = vector.broadcast %cst_11 : f32 to vector<32x512xf32>
    %14 = arith.maximumf %12, %13 : vector<32x512xf32>
    %c0_12 = arith.constant 0 : index
    %c0_13 = arith.constant 0 : index
    %15 = vector.load %arg6[%c0_12, %c0_13] : memref<16x32xf32, #tpu.memory_space<vmem>>, vector<16x32xf32>
    %cst_14 = arith.constant dense<0.000000e+00> : vector<16x512xf32>
    %16 = tpu.matmul %15, %14, %cst_14 {dimension_numbers = #tpu.dot_dimension_numbers<[1], [0], [0], [1], [0, 0, 1, 1], [], []>} : vector<16x32xf32>, vector<32x512xf32>, vector<16x512xf32> -> vector<16x512xf32>
    %c0_15 = arith.constant 0 : index
    %c0_16 = arith.constant 0 : index
    %17 = vector.load %arg7[%c0_15, %c0_16] : memref<16x1xf32, #tpu.memory_space<vmem>>, vector<16x1xf32>
    %18 = vector.broadcast %17 : vector<16x1xf32> to vector<16x512xf32>
    %19 = arith.addf %16, %18 : vector<16x512xf32>
    %c0_17 = arith.constant 0 : index
    %c0_18 = arith.constant 0 : index
    %20 = vector.load %arg8[%c0_17, %c0_18] : memref<16x512xf32, #tpu.memory_space<vmem>>, vector<16x512xf32>
    tpu.vector_store %arg8[%c0_17, %c0_18], %19 {strides = array<i32>} : memref<16x512xf32, #tpu.memory_space<vmem>>, vector<16x512xf32>,
    return
  }
  func.func @transform_0(%arg0: i32) -> (i32, i32) {
    %c0_i32 = arith.constant 0 : i32
    %c0_i32_0 = arith.constant 0 : i32
    return %c0_i32, %arg0 : i32, i32
  }
  func.func @transform_1(%arg0: i32) -> (i32, i32) {
    %c0_i32 = arith.constant 0 : i32
    %c0_i32_0 = arith.constant 0 : i32
    %c0_i32_1 = arith.constant 0 : i32
    return %c0_i32, %c0_i32_0 : i32, i32
  }
  func.func @transform_2(%arg0: i32) -> (i32, i32) {
    %c0_i32 = arith.constant 0 : i32
    %c0_i32_0 = arith.constant 0 : i32
    %c0_i32_1 = arith.constant 0 : i32
    return %c0_i32, %c0_i32_0 : i32, i32
  }
  func.func @transform_3(%arg0: i32) -> (i32, i32) {
    %c0_i32 = arith.constant 0 : i32
    %c0_i32_0 = arith.constant 0 : i32
    %c0_i32_1 = arith.constant 0 : i32
    return %c0_i32, %c0_i32_0 : i32, i32
  }
  func.func @transform_4(%arg0: i32) -> (i32, i32) {
    %c0_i32 = arith.constant 0 : i32
    %c0_i32_0 = arith.constant 0 : i32
    %c0_i32_1 = arith.constant 0 : i32
    return %c0_i32, %c0_i32_0 : i32, i32
  }
  func.func @transform_5(%arg0: i32) -> (i32, i32) {
    %c0_i32 = arith.constant 0 : i32
    %c0_i32_0 = arith.constant 0 : i32
    %c0_i32_1 = arith.constant 0 : i32
    return %c0_i32, %c0_i32_0 : i32, i32
  }
  func.func @transform_6(%arg0: i32) -> (i32, i32) {
    %c0_i32 = arith.constant 0 : i32
    %c0_i32_0 = arith.constant 0 : i32
    %c0_i32_1 = arith.constant 0 : i32
    return %c0_i32, %c0_i32_0 : i32, i32
  }
  func.func @transform_7(%arg0: i32) -> (i32, i32) {
    %c0_i32 = arith.constant 0 : i32
    %c0_i32_0 = arith.constant 0 : i32
    return %c0_i32, %arg0 : i32, i32
  }
}

</mosaic_0001>

<bundles_post_ra>
// kernel: mlp_forward.1
= control target key start
LH: loop header
LB: loop body
LE: loop exit
PB: predicated region body
PF: predicated region fallthrough
CT: control target
= control target key end

     0   :  { %s984_s24 = smov 0   ;;  %s986_s25 = smov 0   ;;  %s1152_s0 = inlined_call_operand.vmem [shape: f32[8,1024], index: 0, kind: input, shape index: {}]   ;;  %s1153_s1 = inlined_call_operand.vmem [shape: f32[32,8], index: 1, kind: input, shape index: {}]   ;;  %s1154_s2 = inlined_call_operand.vmem [shape: f32[32,1], index: 2, kind: input, shape index: {}]   ;;  %s1155_s3 = inlined_call_operand.vmem [shape: f32[32,32], index: 3, kind: input, shape index: {}]   ;;  %s1156_s4 = inlined_call_operand.vmem [shape: f32[32,1], index: 4, kind: input, shape index: {}]   ;;  %s1157_s5 = inlined_call_operand.vmem [shape: f32[16,32], index: 5, kind: input, shape index: {}]   ;;  %s1158_s6 = inlined_call_operand.vmem [shape: f32[16,1], index: 6, kind: input, shape index: {}]   ;;  %s1159_s7 = inlined_call_operand.vmem [shape: f32[16,1024], index: 7, kind: output, shape index: {}]  }
   0x1   :  { %s988_s26 = smov 0  }
   0x2 LB: > { %s997_s27 = sadd.s32 4294967295, %s941_s26   ;;  %s999_s28 = sadd.s32 1, %s941_s26   ;;  %s941_s26 = sphi %s988_s26, %s1163_s26   ;;  %s937_s25 = sphi %s986_s25, %s1162_s25   ;;  %s933_s24 = sphi %s984_s24, %s1161_s24  }
   0x3   : > { %s173_s29 = ssub.s32 %s941_s26, %s999_s28  ;;  %s176_s30 = sadd.s32 1, %s937_s25 }
   0x4   : > { %p174_p0 = scmp.eq.s32.totalorder %s173_s29, 0  ;;  %p186_p1 = scmp.ne.s32.totalorder %s937_s25, %s933_s24 }
   0x5   : > { %p187_p2 = scmp.eq.s32.totalorder %s997_s27, 1  ;;  %p841_p3 = scmp.ge.s32.totalorder %s941_s26, 1 }
   0x6   : > { %s1007_s8 = scalar_select %p174_p0, %s937_s25, %s176_s30  }
   0x7   : > { %p1009_p4 = por %p187_p2, %p186_p1  ;;  %p238_p5 = scmp.lt.s32.totalorder %s941_s26, 3 }
   0x9   : > { %p239_p6 = pnand %p841_p3, %p238_p5 }
   0xa   : > { %s843_s10 = sshll.u32 (!%p239_p6), %s997_s27, 2  ;;  %s266_s21 = sand.u32 (!%p239_p6), 1, %s933_s24  }
   0xb   : > { %242 = sbr.rel (%p239_p6) target bundleno = 509 (0x1fd), region = 48  ;;  %p270_p7 = scmp.lt.s32.totalorder (!%p239_p6), %s843_s10, 7 }
   0xc   : > { %s842_s22 = sshll.u32 (!%p239_p6), %s266_s21, 6 }
   0xd   : > { %s1118_s23 = scalar_lea.vmem (!%p239_p6), [#allocation2], %s842_s22 }
  0x10   : > { %v285_v0 = vld [vmem:[%s1154_s2 + $0x8] sm:$0xff]  ;;  %v943_v1 = vmov 0   ;;  %v287_v2 = vld [vmem:[%s1154_s2 + $0x18] sm:$0xff]  ;;  %s1165_s10 = smov (!%p270_p7, %s843_s10), 7  ;;  %v276_v3 = vld [vmem:[%s1153_s1] sm:$0xff]  ;;  %vm308_vm0 = vcmask 64512  }
  0x11   : > { %917 = vset.pattern.permute.xlu1 %v943_v1  ;;  %916 = vset.pattern.permute.xlu0 %v943_v1  ;;  %s844_s15 = sshll.u32 %s1165_s10, 3  ;;  %v284_v8 = vld [vmem:[%s1154_s2] sm:$0xff]  ;;  %v286_v9 = vld [vmem:[%s1154_s2 + $0x10] sm:$0xff]  ;;  %v277_v10 = vld [vmem:[%s1153_s1 + $0x8] sm:$0xff]  ;;  %vm481_vm1 = vcmask 261120   ;;  %s890_s24 = sshll.u32 (%p1009_p4), %s997_s27, 5 }
  0x12   : > { %295 = vperm.xlu1 %917, %v285_v0   ;;  %305 = vperm.xlu0 %916, %v287_v2   ;;  %s273_s18 = scalar_lea.vmem %s1152_s0, %s844_s15  ;;  %v458_v11 = vld [vmem:[%s1156_s4 + $0x8] sm:$0xff]  ;;  %v457_v12 = vld [vmem:[%s1156_s4] sm:$0xff]  ;;  %v278_v13 = vld [vmem:[%s1153_s1 + $0x10] sm:$0xff]  ;;  %s755_s30 = scalar_lea.vmem (%p1009_p4), %s1159_s7, %s890_s24 }
  0x13   : > { %918 = vset.pattern.permute.xlu2 %v943_v1  ;;  %v280_v4 = vld [vmem:[%s273_s18] sm:$0xff]  ;;  %v281_v5 = vld [vmem:[%s273_s18 + $0x8] sm:$0xff]  ;;  %v282_v6 = vld [vmem:[%s273_s18 + $0x10] sm:$0xff] }
  0x14   : > { %336 = vmatpush.msra.mxu0 %v280_v4  ;;  %365 = vmatpush.msra.mxu1 %v281_v5  ;;  %v283_v7 = vld [vmem:[%s273_s18 + $0x18] sm:$0xff]  ;;  %v629_v14 = vld [vmem:[%s1158_s6 + $0x8] sm:$0xff]  ;;  %v453_v60 = vld [vmem:[%s1155_s3] sm:$0xff] }
  0x15   : > { %394 = vmatpush.msra.mxu2 %v282_v6  ;;  %423 = vmatpush.msra.mxu3 %v283_v7  ;;  %v279_v15 = vld [vmem:[%s1153_s1 + $0x18] sm:$0xff]  ;;  %v454_v6 = vld [vmem:[%s1155_s3 + $0x8] sm:$0xff]  ;;  %v459_v7 = vld [vmem:[%s1156_s4 + $0x10] sm:$0xff] }
  0x16   : > { %845 = vmatmul.msk.f32.vlgmr.msra.gmra.mxu0 %vm308_vm0, %v276_v3  ;;  %849 = vmatmul.msk.f32.vlgmr.msra.gmra.mxu1 %vm308_vm0, %v276_v3  ;;  %v460_v1 = vld [vmem:[%s1156_s4 + $0x18] sm:$0xff] }
  0x17   : > { %853 = vmatmul.msk.f32.vlgmr.msra.gmra.mxu2 %vm308_vm0, %v276_v3  ;;  %857 = vmatmul.msk.f32.vlgmr.msra.gmra.mxu3 %vm308_vm0, %v276_v3 }
  0x18   : > { %478 = vperm.xlu2 %918, %v460_v1  }
  0x1a   : > { %290 = vperm.xlu1 %917, %v284_v8   ;;  %300 = vperm.xlu0 %916, %v286_v9   ;;  %v455_v8 = vld [vmem:[%s1155_s3 + $0x10] sm:$0xff]  ;;  %v628_v9 = vld [vmem:[%s1158_s6] sm:$0xff] }
  0x1e   : > { %846 = vmatmul.msk.f32.gmra.mxu0 %vm308_vm0, %v277_v10  ;;  %850 = vmatmul.msk.f32.gmra.mxu1 %vm308_vm0, %v277_v10 }
  0x1f   : > { %854 = vmatmul.msk.f32.gmra.mxu2 %vm308_vm0, %v277_v10  ;;  %858 = vmatmul.msk.f32.gmra.mxu3 %vm308_vm0, %v277_v10  ;;  %v456_v10 = vld [vmem:[%s1155_s3 + $0x18] sm:$0xff] }
  0x20   : > { %473 = vperm.xlu2 %918, %v459_v7  }
  0x22   : > { %468 = vperm.xlu0 %916, %v458_v11   ;;  %463 = vperm.xlu1 %917, %v457_v12  }
  0x26   : > { %847 = vmatmul.msk.f32.gmra.mxu0 %vm308_vm0, %v278_v13  ;;  %851 = vmatmul.msk.f32.gmra.mxu1 %vm308_vm0, %v278_v13 }
  0x27   : > { %855 = vmatmul.msk.f32.gmra.mxu2 %vm308_vm0, %v278_v13  ;;  %859 = vmatmul.msk.f32.gmra.mxu3 %vm308_vm0, %v278_v13 }
  0x28   : > { %632 = vperm.xlu2 %918, %v628_v9  }
  0x2a   : > { %637 = vperm.xlu0 %916, %v629_v14  }
  0x2e   : > { %848 = vmatmul.msk.f32.gmra.mxu0 %vm308_vm0, %v279_v15  ;;  %852 = vmatmul.msk.f32.gmra.mxu1 %vm308_vm0, %v279_v15 }
  0x2f   : > { %856 = vmatmul.msk.f32.gmra.mxu2 %vm308_vm0, %v279_v15  ;;  %860 = vmatmul.msk.f32.gmra.mxu3 %vm308_vm0, %v279_v15 }
  0x72   : > { %v479_v15 = vpop.permute.xlu2 %478 }
  0x84   : > { %v306_v22 = vpop.permute.xlu0 %305  ;;  %v296_v27 = vpop.permute.xlu1 %295 }
  0x8c   : > { %v301_v28 = vpop.permute.xlu0 %300  ;;  %v291_v41 = vpop.permute.xlu1 %290 }
  0x93   : > { %v338_v16 = vpop.f32.mrf.mxu0  ;;  %v367_v17 = vpop.f32.mrf.mxu1 }
  0x94   : > { %v339_v44 = vadd.f32 %v338_v16, %v291_v41  ;;  %v368_v45 = vadd.f32 %v367_v17, %v291_v41 }
  0x96   : > { %v437_v54 = vmax.f32 %v339_v44, 0.0  ;;  %v438_v55 = vmax.f32 %v368_v45, 0.0  ;;  %v626_v45 = vld [vmem:[%s1157_s5] sm:$0xff] }
  0x9a   : > { %v396_v18 = vpop.f32.mrf.mxu2  ;;  %v425_v19 = vpop.f32.mrf.mxu3 }
  0x9b   : > { %v341_v20 = vpop.f32.mrf.mxu0  ;;  %v370_v21 = vpop.f32.mrf.mxu1  ;;  %v397_v61 = vadd.f32 %v396_v18, %v291_v41  ;;  %v426_v62 = vadd.f32 %v425_v19, %v291_v41 }
  0x9c   : > { %v342_v37 = vadd.f32 %v341_v20, %v296_v27  ;;  %v371_v38 = vadd.f32 %v370_v21, %v296_v27 }
  0x9d   : > { %v439_v4 = vmax.f32 %v397_v61, 0.0  ;;  %v440_v5 = vmax.f32 %v426_v62, 0.0 }
  0x9e   : > { %v441_v46 = vmax.f32 %v342_v37, 0.0  ;;  %v442_v47 = vmax.f32 %v371_v38, 0.0 }
  0xa2   : > { %v399_v23 = vpop.f32.mrf.mxu2  ;;  %v428_v24 = vpop.f32.mrf.mxu3 }
  0xa3   : > { %v344_v25 = vpop.f32.mrf.mxu0  ;;  %v373_v26 = vpop.f32.mrf.mxu1  ;;  %v400_v56 = vadd.f32 %v399_v23, %v296_v27  ;;  %v429_v57 = vadd.f32 %v428_v24, %v296_v27 }
  0xa4   : > { %v345_v33 = vadd.f32 %v344_v25, %v301_v28  ;;  %v374_v34 = vadd.f32 %v373_v26, %v301_v28  ;;  %v469_v27 = vpop.permute.xlu0 %468 }
  0xa5   : > { %v443_v2 = vmax.f32 %v400_v56, 0.0  ;;  %v444_v3 = vmax.f32 %v429_v57, 0.0 }
  0xa6   : > { %v445_v42 = vmax.f32 %v345_v33, 0.0  ;;  %v446_v43 = vmax.f32 %v374_v34, 0.0 }
  0xaa   : > { %v402_v29 = vpop.f32.mrf.mxu2  ;;  %v431_v30 = vpop.f32.mrf.mxu3 }
  0xab   : > { %v347_v31 = vpop.f32.mrf.mxu0  ;;  %v376_v32 = vpop.f32.mrf.mxu1  ;;  %v403_v50 = vadd.f32 %v402_v29, %v301_v28  ;;  %v432_v51 = vadd.f32 %v431_v30, %v301_v28 }
  0xac   : > { %v348_v35 = vadd.f32 %v347_v31, %v306_v22  ;;  %v377_v36 = vadd.f32 %v376_v32, %v306_v22  ;;  %v464_v32 = vpop.permute.xlu1 %463 }
  0xad   : > { %v447_v63 = vmax.f32 %v403_v50, 0.0  ;;  %v448_v0 = vmax.f32 %v432_v51, 0.0 }
  0xae   : > { %v449_v39 = vmax.f32 %v348_v35, 0.0  ;;  %v450_v40 = vmax.f32 %v377_v36, 0.0 }
  0xb0   : > { %506 = vmatpush.msrb.mxu0 %v449_v39  ;;  %535 = vmatpush.msrb.mxu1 %v450_v40 }
  0xb2   : > { %v405_v48 = vpop.f32.mrf.mxu2  ;;  %v434_v49 = vpop.f32.mrf.mxu3  ;;  %507 = vmatpush.msrb.mxu0 %v445_v42  ;;  %536 = vmatpush.msrb.mxu1 %v446_v43 }
  0xb3   : > { %v406_v52 = vadd.f32 %v405_v48, %v306_v22  ;;  %v435_v53 = vadd.f32 %v434_v49, %v306_v22  ;;  %v474_v22 = vpop.permute.xlu2 %473 }
  0xb4   : > { %508 = vmatpush.msrb.mxu0 %v441_v46  ;;  %537 = vmatpush.msrb.mxu1 %v442_v47 }
  0xb5   : > { %v451_v58 = vmax.f32 %v406_v52, 0.0  ;;  %v452_v59 = vmax.f32 %v435_v53, 0.0 }
  0xb6   : > { %509 = vmatpush.msrb.mxu0 %v437_v54  ;;  %538 = vmatpush.msrb.mxu1 %v438_v55 }
  0xb7   : > { %564 = vmatpush.msrb.mxu2 %v451_v58  ;;  %593 = vmatpush.msrb.mxu3 %v452_v59 }
  0xb8   : > { %861 = vmatmul.msk.f32.vlgmr.msrb.gmra.mxu0 %vm481_vm1, %v453_v60  ;;  %865 = vmatmul.msk.f32.vlgmr.msrb.gmra.mxu1 %vm481_vm1, %v453_v60 }
  0xb9   : > { %565 = vmatpush.msrb.mxu2 %v447_v63  ;;  %594 = vmatpush.msrb.mxu3 %v448_v0 }
  0xbb   : > { %566 = vmatpush.msrb.mxu2 %v443_v2  ;;  %595 = vmatpush.msrb.mxu3 %v444_v3  ;;  %v633_v1 = vpop.permute.xlu2 %632 }
  0xbd   : > { %567 = vmatpush.msrb.mxu2 %v439_v4  ;;  %596 = vmatpush.msrb.mxu3 %v440_v5 }
  0xbe   : > { %869 = vmatmul.msk.f32.vlgmr.msrb.gmra.mxu2 %vm481_vm1, %v453_v60  ;;  %873 = vmatmul.msk.f32.vlgmr.msrb.gmra.mxu3 %vm481_vm1, %v453_v60  ;;  %v627_v60 = vld [vmem:[%s1157_s5 + $0x8] sm:$0xff] }
  0xc0   : > { %862 = vmatmul.msk.f32.gmra.mxu0 %vm481_vm1, %v454_v6  ;;  %866 = vmatmul.msk.f32.gmra.mxu1 %vm481_vm1, %v454_v6 }
  0xc6   : > { %870 = vmatmul.msk.f32.gmra.mxu2 %vm481_vm1, %v454_v6  ;;  %874 = vmatmul.msk.f32.gmra.mxu3 %vm481_vm1, %v454_v6  ;;  %v638_v6 = vpop.permute.xlu0 %637 }
  0xc8   : > { %863 = vmatmul.msk.f32.gmra.mxu0 %vm481_vm1, %v455_v8  ;;  %867 = vmatmul.msk.f32.gmra.mxu1 %vm481_vm1, %v455_v8 }
  0xce   : > { %871 = vmatmul.msk.f32.gmra.mxu2 %vm481_vm1, %v455_v8  ;;  %875 = vmatmul.msk.f32.gmra.mxu3 %vm481_vm1, %v455_v8 }
  0xd0   : > { %864 = vmatmul.msk.f32.gmra.mxu0 %vm481_vm1, %v456_v10  ;;  %868 = vmatmul.msk.f32.gmra.mxu1 %vm481_vm1, %v456_v10 }
  0xd6   : > { %872 = vmatmul.msk.f32.gmra.mxu2 %vm481_vm1, %v456_v10  ;;  %876 = vmatmul.msk.f32.gmra.mxu3 %vm481_vm1, %v456_v10 }
 0x135   : > { %v511_v11 = vpop.f32.mrf.mxu0  ;;  %v540_v12 = vpop.f32.mrf.mxu1 }
 0x136   : > { %v512_v39 = vadd.f32 %v511_v11, %v464_v32  ;;  %v541_v40 = vadd.f32 %v540_v12, %v464_v32 }
 0x138   : > { %v610_v43 = vmax.f32 %v512_v39, 0.0  ;;  %v611_v44 = vmax.f32 %v541_v40, 0.0 }
 0x13d   : > { %v514_v13 = vpop.f32.mrf.mxu0  ;;  %v543_v14 = vpop.f32.mrf.mxu1 }
 0x13e   : > { %v515_v30 = vadd.f32 %v514_v13, %v469_v27  ;;  %v544_v31 = vadd.f32 %v543_v14, %v469_v27 }
 0x140   : > { %v614_v41 = vmax.f32 %v515_v30, 0.0  ;;  %v615_v42 = vmax.f32 %v544_v31, 0.0 }
 0x141   : > { %v569_v16 = vpop.f32.mrf.mxu2  ;;  %v598_v17 = vpop.f32.mrf.mxu3 }
 0x142   : > { %v570_v56 = vadd.f32 %v569_v16, %v464_v32  ;;  %v599_v57 = vadd.f32 %v598_v17, %v464_v32 }
 0x144   : > { %v612_v63 = vmax.f32 %v570_v56, 0.0  ;;  %v613_v0 = vmax.f32 %v599_v57, 0.0 }
 0x145   : > { %v517_v18 = vpop.f32.mrf.mxu0  ;;  %v546_v19 = vpop.f32.mrf.mxu1 }
 0x146   : > { %v518_v23 = vadd.f32 %v517_v18, %v474_v22  ;;  %v547_v24 = vadd.f32 %v546_v19, %v474_v22 }
 0x148   : > { %v618_v35 = vmax.f32 %v518_v23, 0.0  ;;  %v619_v36 = vmax.f32 %v547_v24, 0.0 }
 0x149   : > { %v572_v20 = vpop.f32.mrf.mxu2  ;;  %v601_v21 = vpop.f32.mrf.mxu3 }
 0x14a   : > { %v573_v52 = vadd.f32 %v572_v20, %v469_v27  ;;  %v602_v53 = vadd.f32 %v601_v21, %v469_v27 }
 0x14c   : > { %v616_v61 = vmax.f32 %v573_v52, 0.0  ;;  %v617_v62 = vmax.f32 %v602_v53, 0.0 }
 0x14d   : > { %v520_v25 = vpop.f32.mrf.mxu0  ;;  %v549_v26 = vpop.f32.mrf.mxu1 }
 0x14e   : > { %v521_v28 = vadd.f32 %v520_v25, %v479_v15  ;;  %v550_v29 = vadd.f32 %v549_v26, %v479_v15 }
 0x150   : > { %v622_v33 = vmax.f32 %v521_v28, 0.0  ;;  %v623_v34 = vmax.f32 %v550_v29, 0.0 }
 0x151   : > { %v575_v37 = vpop.f32.mrf.mxu2  ;;  %v604_v38 = vpop.f32.mrf.mxu3 }
 0x152   : > { %658 = vmatpush.msra.mxu0 %v622_v33  ;;  %681 = vmatpush.msra.mxu1 %v623_v34  ;;  %v576_v48 = vadd.f32 %v575_v37, %v474_v22  ;;  %v605_v49 = vadd.f32 %v604_v38, %v474_v22 }
 0x154   : > { %659 = vmatpush.msra.mxu0 %v618_v35  ;;  %682 = vmatpush.msra.mxu1 %v619_v36  ;;  %v620_v58 = vmax.f32 %v576_v48, 0.0  ;;  %v621_v59 = vmax.f32 %v605_v49, 0.0 }
 0x156   : > { %660 = vmatpush.msra.mxu0 %v614_v41  ;;  %683 = vmatpush.msra.mxu1 %v615_v42 }
 0x158   : > { %661 = vmatpush.msra.mxu0 %v610_v43  ;;  %684 = vmatpush.msra.mxu1 %v611_v44 }
 0x159   : > { %v578_v46 = vpop.f32.mrf.mxu2  ;;  %v607_v47 = vpop.f32.mrf.mxu3  ;;  %877 = vmatmul.msk.f32.vlgmr.msra.gmra.mxu0 %vm481_vm1, %v626_v45  ;;  %879 = vmatmul.msk.f32.vlgmr.msra.gmra.mxu1 %vm481_vm1, %v626_v45 }
 0x15a   : > { %v579_v50 = vadd.f32 %v578_v46, %v479_v15  ;;  %v608_v51 = vadd.f32 %v607_v47, %v479_v15 }
 0x15c   : > { %v624_v54 = vmax.f32 %v579_v50, 0.0  ;;  %v625_v55 = vmax.f32 %v608_v51, 0.0 }
 0x15e   : > { %704 = vmatpush.msra.mxu2 %v624_v54  ;;  %727 = vmatpush.msra.mxu3 %v625_v55 }
 0x160   : > { %705 = vmatpush.msra.mxu2 %v620_v58  ;;  %728 = vmatpush.msra.mxu3 %v621_v59 }
 0x161   : > { %878 = vmatmul.msk.f32.gmra.mxu0 %vm481_vm1, %v627_v60  ;;  %880 = vmatmul.msk.f32.gmra.mxu1 %vm481_vm1, %v627_v60 }
 0x162   : > { %706 = vmatpush.msra.mxu2 %v616_v61  ;;  %729 = vmatpush.msra.mxu3 %v617_v62 }
 0x164   : > { %707 = vmatpush.msra.mxu2 %v612_v63  ;;  %730 = vmatpush.msra.mxu3 %v613_v0 }
 0x165   : > { %881 = vmatmul.msk.f32.vlgmr.msra.gmra.mxu2 %vm481_vm1, %v626_v45  ;;  %883 = vmatmul.msk.f32.vlgmr.msra.gmra.mxu3 %vm481_vm1, %v626_v45 }
 0x16d   : > { %882 = vmatmul.msk.f32.gmra.mxu2 %vm481_vm1, %v627_v60  ;;  %884 = vmatmul.msk.f32.gmra.mxu3 %vm481_vm1, %v627_v60 }
 0x1d6   : > { %v663_v2 = vpop.f32.mrf.mxu0  ;;  %v686_v3 = vpop.f32.mrf.mxu1 }
 0x1d7   : > { %v664_v4 = vadd.f32 %v663_v2, %v633_v1  ;;  %v687_v5 = vadd.f32 %v686_v3, %v633_v1 }
 0x1d9   : > { %738 = vst [vmem:[%s1118_s23] sm:$0xff] %v664_v4 }
 0x1da   : > { %739 = vst [vmem:[%s1118_s23 + $0x8] sm:$0xff] %v687_v5 }
 0x1de   : > { %v666_v7 = vpop.f32.mrf.mxu0  ;;  %v689_v8 = vpop.f32.mrf.mxu1 }
 0x1df   : > { %v667_v9 = vadd.f32 %v666_v7, %v638_v6  ;;  %v690_v10 = vadd.f32 %v689_v8, %v638_v6 }
 0x1e0   : > { %v768_v19 = vld [vmem:[%s1118_s23] sm:$0xff] (%p1009_p4) }
 0x1e1   : > { %742 = vst [vmem:[%s1118_s23 + $0x20] sm:$0xff] %v667_v9  ;;  %v770_v20 = vld [vmem:[%s1118_s23 + $0x8] sm:$0xff] (%p1009_p4) }
 0x1e2   : > { %743 = vst [vmem:[%s1118_s23 + $0x28] sm:$0xff] %v690_v10 }
 0x1e3   : > { %769 = vst [vmem:[%s755_s30] sm:$0xff] (%p1009_p4), %v768_v19 }
 0x1e4   : > { %771 = vst [vmem:[%s755_s30 + $0x8] sm:$0xff] (%p1009_p4), %v770_v20 }
 0x1e8   : > { %v709_v11 = vpop.f32.mrf.mxu2  ;;  %v732_v12 = vpop.f32.mrf.mxu3  ;;  %v776_v23 = vld [vmem:[%s1118_s23 + $0x20] sm:$0xff] (%p1009_p4) }
 0x1e9   : > { %v710_v13 = vadd.f32 %v709_v11, %v633_v1  ;;  %v733_v14 = vadd.f32 %v732_v12, %v633_v1  ;;  %v778_v24 = vld [vmem:[%s1118_s23 + $0x28] sm:$0xff] (%p1009_p4)  ;;  %777 = vst [vmem:[%s755_s30 + $0x40] sm:$0xff] (%p1009_p4), %v776_v23 }
 0x1ea   : > { %779 = vst [vmem:[%s755_s30 + $0x48] sm:$0xff] (%p1009_p4), %v778_v24 }
 0x1eb   : > { %740 = vst [vmem:[%s1118_s23 + $0x10] sm:$0xff] %v710_v13 }
 0x1ec   : > { %741 = vst [vmem:[%s1118_s23 + $0x18] sm:$0xff] %v733_v14 }
 0x1f0   : > { %v712_v15 = vpop.f32.mrf.mxu2  ;;  %v735_v16 = vpop.f32.mrf.mxu3  ;;  %752 = sbr.rel (!%p1009_p4) target bundleno = 509 (0x1fd), region = 52 }
 0x1f1   : > { %v713_v17 = vadd.f32 %v712_v15, %v638_v6  ;;  %v736_v18 = vadd.f32 %v735_v16, %v638_v6 }
 0x1f2   : > { %v772_v21 = vld [vmem:[%s1118_s23 + $0x10] sm:$0xff] (%p1009_p4) }
 0x1f3   : > { %744 = vst [vmem:[%s1118_s23 + $0x30] sm:$0xff] %v713_v17  ;;  %v774_v22 = vld [vmem:[%s1118_s23 + $0x18] sm:$0xff] (%p1009_p4) }
 0x1f4   : > { %745 = vst [vmem:[%s1118_s23 + $0x38] sm:$0xff] %v736_v18 }
 0x1f5   : > { %773 = vst [vmem:[%s755_s30 + $0x10] sm:$0xff] %v772_v21 }
 0x1f6   : > { %775 = vst [vmem:[%s755_s30 + $0x18] sm:$0xff] %v774_v22 }
 0x1fa   : > { %v780_v25 = vld [vmem:[%s1118_s23 + $0x30] sm:$0xff] }
 0x1fb   : > { %v782_v26 = vld [vmem:[%s1118_s23 + $0x38] sm:$0xff]  ;;  %781 = vst [vmem:[%s755_s30 + $0x50] sm:$0xff] %v780_v25 }
 0x1fc   : > { %783 = vst [vmem:[%s755_s30 + $0x58] sm:$0xff] %v782_v26 }
 0x1fd PF: > { %p14_p8 = scmp.ge.s32.totalorder %s999_s28, 4   ;;  %s1161_s24 = smov %s937_s25 }
 0x1fe   : > { %s1162_s25 = smov %s1007_s8  ;;  %s1163_s26 = smov %s999_s28 }
 0x1ff   :  { %16 = sbr.rel (!%p14_p8) target bundleno = 2 (0x2), region = 101 }

</bundles_post_ra>
